<compile_context>
chip_gen: v7x
topology: tpu7x:2x2x1
jax: 0.10.0
libtpu: 0.0.40
codegen_flags: <defaults>
</compile_context>

<pallas_src>
import jax
import jax.numpy as jnp
from jax.experimental import pallas as pl
from jax.experimental.pallas import tpu as pltpu


def _mix32(x):
    """Cheap int32 avalanche hash (scalar-unit only: xor/shift/mul, wraps)."""
    x = (x ^ (x >> 16)) * jnp.int32(0x45D9F3B)
    x = (x ^ (x >> 16)) * jnp.int32(0x45D9F3B)
    return x ^ (x >> 16)


def _draw_index(seed, n):
    """Pseudo-random index in [0, n) via Lemire multiply-shift (no division)."""
    h = _mix32(seed)
    r15 = h & jnp.int32(0x7FFF)            # 15 uniform-ish bits, non-negative
    return (r15 * n) >> 15                  # in [0, n), unbiased when n | 2^15


def _random_choice_kernel(seed_ref, n_ref, pool_ref, out_ref):
    """Single draw: one scalar hash + one SMEM scalar load + one SMEM store."""
    idx = _draw_index(seed_ref[0], n_ref[0])
    out_ref[0] = pool_ref[idx]


def _random_choice_batch_kernel(seed_ref, n_ref, pool_ref, out_ref):
    """K draws per call to amortize per-pallas_call fixed overhead."""
    n = n_ref[0]
    k_draws = out_ref.shape[0]              # static

    def body(k, carry):
        idx = _draw_index(seed_ref[0] + k, n)
        out_ref[k] = pool_ref[idx]
        return carry

    jax.lax.fori_loop(0, k_draws, body, None, unroll=True)


def random_predictor_forward(datum, train_y_pool, seed):
    """Pallas equivalent of RandomPredictor.forward.

    `datum` is accepted (like the torch module) but ignored.
    `train_y_pool` holds the training targets [d.y for d in data.train].
    `seed` should differ per call (random.choice advances global RNG state).
    Returns a 0-d float32 scalar (== torch.tensor([guess]).squeeze()).
    """
    del datum  # RandomPredictor ignores its input.
    pool = jnp.asarray(train_y_pool, dtype=jnp.float32).reshape(-1)  # 1-D SMEM
    n = pool.shape[0]
    seed_arr = jnp.asarray([seed], dtype=jnp.int32)
    n_arr = jnp.asarray([n], dtype=jnp.int32)

    out = pl.pallas_call(
        _random_choice_kernel,
        out_shape=jax.ShapeDtypeStruct((1,), jnp.float32),
        in_specs=[
            pl.BlockSpec(memory_space=pltpu.MemorySpace.SMEM),  # seed
            pl.BlockSpec(memory_space=pltpu.MemorySpace.SMEM),  # n
            pl.BlockSpec(memory_space=pltpu.MemorySpace.SMEM),  # target pool
        ],
        out_specs=pl.BlockSpec(memory_space=pltpu.MemorySpace.SMEM),
    )(seed_arr, n_arr, pool)
    return out[0]  # 0-d scalar


def random_predictor_forward_batched(datum, train_y_pool, seed, num_draws):
    """K independent draws in one kernel launch (throughput path)."""
    del datum
    pool = jnp.asarray(train_y_pool, dtype=jnp.float32).reshape(-1)
    n = pool.shape[0]
    seed_arr = jnp.asarray([seed], dtype=jnp.int32)
    n_arr = jnp.asarray([n], dtype=jnp.int32)

    return pl.pallas_call(
        _random_choice_batch_kernel,
        out_shape=jax.ShapeDtypeStruct((num_draws,), jnp.float32),
        in_specs=[
            pl.BlockSpec(memory_space=pltpu.MemorySpace.SMEM),
            pl.BlockSpec(memory_space=pltpu.MemorySpace.SMEM),
            pl.BlockSpec(memory_space=pltpu.MemorySpace.SMEM),
        ],
        out_specs=pl.BlockSpec(memory_space=pltpu.MemorySpace.SMEM),
    )(seed_arr, n_arr, pool)


if __name__ == "__main__":
    key = jax.random.PRNGKey(0)
    k_datum, k_pool = jax.random.split(key)

    # `datum` in the torch module is an arbitrary input that is ignored.
    datum = jax.random.normal(k_datum, (2, 4, 16, 16), dtype=jnp.float32)

    # Synthetic self.data.train targets: 16 deterministic y values.
    train_y_pool = jax.random.uniform(k_pool, (16,), dtype=jnp.float32) * 100.0

    # Single draw (matches torch forward()).
    guess = random_predictor_forward(datum, train_y_pool, seed=0)
    guess = jax.block_until_ready(guess)
    assert guess.shape == (), f"expected 0-d scalar, got {guess.shape}"
    assert bool(jnp.any(jnp.isclose(train_y_pool, guess))), "guess not in pool"

    # Batched draws (amortized-overhead path); every draw must be in the pool.
    draws = random_predictor_forward_batched(
        datum, train_y_pool, seed=1, num_draws=8)
    draws = jax.block_until_ready(draws)
    assert draws.shape == (8,)
    assert bool(jnp.all(jnp.any(
        jnp.isclose(train_y_pool[None, :], draws[:, None]), axis=1))), \
        "batched guess not in pool"

    print("KERNEL_OK")
</pallas_src>

<mosaic_0001>
module attributes {stable_mosaic.version = 11 : i64} {
  func.func @_random_choice_kernel(%arg0: memref<1xi32, #tpu.memory_space<smem>>, %arg1: memref<1xi32, #tpu.memory_space<smem>>, %arg2: memref<16xf32, #tpu.memory_space<smem>>, %arg3: memref<1xf32, #tpu.memory_space<smem>>) attributes {dimension_semantics = [], scalar_prefetch = 0 : i64, scratch_operands = 0 : i64, tpu.core_type = #tpu.core_type<tc>} {
    %c0 = arith.constant 0 : index
    %0 = memref.load %arg0[%c0] : memref<1xi32, #tpu.memory_space<smem>>
    %c0_0 = arith.constant 0 : index
    %1 = memref.load %arg1[%c0_0] : memref<1xi32, #tpu.memory_space<smem>>
    %c16_i32 = arith.constant 16 : i32
    %2 = arith.shrsi %0, %c16_i32 : i32
    %3 = arith.xori %0, %2 : i32
    %c73244475_i32 = arith.constant 73244475 : i32
    %4 = arith.muli %3, %c73244475_i32 : i32
    %c16_i32_1 = arith.constant 16 : i32
    %5 = arith.shrsi %4, %c16_i32_1 : i32
    %6 = arith.xori %4, %5 : i32
    %c73244475_i32_2 = arith.constant 73244475 : i32
    %7 = arith.muli %6, %c73244475_i32_2 : i32
    %c16_i32_3 = arith.constant 16 : i32
    %8 = arith.shrsi %7, %c16_i32_3 : i32
    %9 = arith.xori %7, %8 : i32
    %c32767_i32 = arith.constant 32767 : i32
    %10 = arith.andi %9, %c32767_i32 : i32
    %11 = arith.muli %10, %1 : i32
    %c15_i32 = arith.constant 15 : i32
    %12 = arith.shrsi %11, %c15_i32 : i32
    %13 = arith.index_cast %12 : i32 to index
    %14 = memref.load %arg2[%13] : memref<16xf32, #tpu.memory_space<smem>>
    %c0_4 = arith.constant 0 : index
    %15 = memref.load %arg3[%c0_4] : memref<1xf32, #tpu.memory_space<smem>>
    memref.store %14, %arg3[%c0_4] : memref<1xf32, #tpu.memory_space<smem>>
    return
  }
}

</mosaic_0001>

<bundles_post_ra>
// kernel: tpu_custom_call.1
= control target key start
LH: loop header
LB: loop body
LE: loop exit
PB: predicated region body
PF: predicated region fallthrough
CT: control target
= control target key end

     0   :  { %10 = vsyncpa [#allocation6], 0  ;;  %s134_s0 = inlined_call_operand.<no memory space> [shape: s32[1], index: 0, kind: input, shape index: {}]   ;;  %s135_s1 = inlined_call_operand.<no memory space> [shape: s32[1], index: 1, kind: input, shape index: {}]   ;;  %s136_s2 = inlined_call_operand.vmem [shape: f32[16], index: 2, kind: input, shape index: {}]   ;;  %s137_s3 = inlined_call_operand.hbm [shape: f32[1], index: 3, kind: output, shape index: {}]  }
   0x1   :  { %11 = vsyncpa [#allocation5], 0  ;;  %s22_s14 = sshll.u32 %s136_s2, 4  ;;  %s23_s14 = int_to_ptr.vmem [resolvable:$true] %s22_s14 }
   0x2   :  { %s62_s15 = scalar_lea.vmem %s23_s14, 16  ;;  %p67_p1 = scmp.lt.s32.totalorder %s23_s14, %s23_s14 }
   0x3   :  { %p63_p0 = scmp.ne.s32.totalorder %s23_s14, %s62_s15  ;;  %p68_p2 = scmp.lt.s32.totalorder %s62_s15, %s62_s15 }
   0x5   :  { %p69_p3 = por %p68_p2, %p67_p1 }
   0x7   :  { %p70_p4 = pnand %p69_p3, %p63_p0 }
   0x9   :  { %73 = shalt.err (!%p70_p4)
}
   0xa   :  { %s88_s16 = smov [#allocation4]  }
   0xb   :  { %25 = dma.vmem_to_smem %s23_s14, 16, %s88_s16, [#allocation6]  }
   0xc   :  { %84 = dma.done.wait [#allocation6], 16  }
   0xd   :  { %85 = vsyncadd [#allocation6], 4294967280 }
   0xe   :  { %29 = sfence }
   0xf   :  { %s32_s19 = sshra.s32 %s134_s0, 16  ;;  %s74_s9 = scalar_lea.hbm %s137_s3, 16 }
  0x10   :  { %s33_s2 = sxor.u32 %s32_s19, %s134_s0  ;;  %p75_p5 = scmp.ne.s32.totalorder %s137_s3, %s74_s9 }
  0x11   :  { %s34_s22 = smul.u32 73244475, %s33_s2  ;;  %p78_p6 = scmp.lt.u32.totalorder %s74_s9, %s137_s3 }
  0x13   :  { %s35_s23 = sshra.s32 %s34_s22, 16  ;;  %p80_p7 = pnand %p78_p6, %p75_p5 }
  0x14   :  { %s36_s24 = sxor.u32 %s35_s23, %s34_s22 }
  0x15   :  { %s37_s25 = smul.u32 73244475, %s36_s24 }
  0x17   :  { %s38_s26 = sshra.s32 %s37_s25, 16 }
  0x18   :  { %s39_s27 = sxor.u32 %s38_s26, %s37_s25 }
  0x19   :  { %s40_s28 = sand.u32 32767, %s39_s27 }
  0x1a   :  { %s41_s4 = smul.u32 %s40_s28, %s135_s1 }
  0x1c   :  { %s42_s5 = sshra.s32 %s41_s4, 15 }
  0x1d   :  { %s43_s6 = sld [smem:[#allocation4 + %s42_s5]] }
  0x23   :  { %45 = sst [smem:[#allocation7]] %s43_s6 }
  0x24   :  { %83 = shalt.err (!%p80_p7)
}
  0x25   :  { %s89_s13 = smov [#allocation7]  }
  0x26   :  { %53 = dma.smem_to_hbm %s89_s13, 16, %s137_s3, [#allocation5]  }
  0x27   :  { %86 = dma.done.wait [#allocation5], 16  }
  0x28   :  { %87 = vsyncadd [#allocation5], 4294967280 }
  0x29   :  { %57 = sfence }
  0x2a   :  { %58 = vsyncpa [#allocation5], 1 }
  0x2b   :  { %59 = vsyncpa [#allocation6], 1 }

</bundles_post_ra>
